<compile_context>
chip_gen: v5e
topology: v5e:2x2
jax: 0.10.0
libtpu: 0.0.40
codegen_flags: <defaults>
</compile_context>

<pallas_src>
import functools

import jax
import jax.numpy as jnp
from jax.experimental import pallas as pl
from jax.experimental.pallas import tpu as pltpu


def mlp_kernel(x_ref, w1_ref, b1_ref, w2_ref, b2_ref, o_ref):
    # x_ref  : (block_b, IN) f32  -- streamed batch tile (cast to bf16 here)
    # w1_ref : (IN, H)       bf16 -- VMEM-resident weights (constant index_map)
    # b1_ref : (1, H)        f32  -- resident bias row
    # w2_ref : (1, H)        bf16 -- resident second-layer weights
    # b2_ref : (1,)          f32  -- SMEM scalar
    # o_ref  : (1, block_b)  f32  -- lane-dense: batch on the lane axis
    x_bf = x_ref[...].astype(jnp.bfloat16)
    h = jnp.dot(x_bf, w1_ref[...], preferred_element_type=jnp.float32)
    h = jnp.maximum(h + b1_ref[...], 0.0)                      # (block_b, H) f32

    # Second linear layer: contract hidden with batch landing on lanes.
    # bf16 operands halve the bytes through the relayout and use the bf16 MXU
    # path; accumulation is f32.
    z = jnp.einsum("oh,bh->ob", w2_ref[...], h.astype(jnp.bfloat16),
                   preferred_element_type=jnp.float32)          # (1, block_b)
    z = z + b2_ref[0]

    # Exact sigmoid (exp on the EUP; divide is one extra op, not a bottleneck).
    o_ref[...] = (1.0 / (1.0 + jnp.exp(-z))).astype(o_ref.dtype)


def _round_up(x, m):
    return ((x + m - 1) // m) * m


@functools.partial(jax.jit, static_argnames=("block_b",))
def neural_net_forward(x, w1, b1, w2, b2, *, block_b=None):
    """x: (B, input_size) f32; w1: (input_size, H); b1: (H,); w2: (H,) or (H,1); b2: ().

    Returns (B, 1) f32, matching torch.sigmoid(linear2(relu(linear1(x)))).
    """
    B, in_size = x.shape
    H = w1.shape[1]

    if block_b is None:
        if B <= 1024:
            # Single tile; per-step overhead is irrelevant at this size.
            block_b = _round_up(B, 8)
        else:
            # Large batch: big lane-dense tiles (amortize grid-step overhead),
            # but always >= 2 tiles so the "parallel" axis spans both
            # TensorCores on v7x.  8192 rows keeps the (lane-padded) x tile,
            # its double buffer, and the f32/bf16 intermediates well under the
            # raised VMEM limit on all of v5e/v6e/v7x.
            block_b = min(8192, _round_up(pl.cdiv(B, 2), 128))
    n_tiles = pl.cdiv(B, block_b)
    b_pad = n_tiles * block_b

    # Tiny resident parameters (one small DMA each; W1/b1/w2 stay in VMEM).
    w1_bf = w1.astype(jnp.bfloat16)
    b1_r = jnp.reshape(b1, (1, H)).astype(jnp.float32)
    w2_bf = jnp.reshape(w2, (1, H)).astype(jnp.bfloat16)
    b2_s = jnp.reshape(b2, (1,)).astype(jnp.float32)

    out = pl.pallas_call(
        mlp_kernel,
        out_shape=jax.ShapeDtypeStruct((1, b_pad), jnp.float32),
        grid_spec=pltpu.PrefetchScalarGridSpec(
            num_scalar_prefetch=0,
            grid=(n_tiles,),
            in_specs=[
                pl.BlockSpec((block_b, in_size), lambda i: (i, 0)),  # x tile (ragged tail masked)
                pl.BlockSpec((in_size, H), lambda i: (0, 0)),        # W1 resident
                pl.BlockSpec((1, H), lambda i: (0, 0)),              # b1 resident
                pl.BlockSpec((1, H), lambda i: (0, 0)),              # w2 resident
                pl.BlockSpec(memory_space=pltpu.MemorySpace.SMEM),   # b2 scalar
            ],
            out_specs=pl.BlockSpec((1, block_b), lambda i: (0, i)),  # lane-dense
        ),
        compiler_params=pltpu.CompilerParams(
            dimension_semantics=("parallel",),   # independent batch tiles (2 TCs on v7x)
            vmem_limit_bytes=48 * 1024 * 1024,   # large tiles fit on v5e; < v7x 64 MiB physical
        ),
    )(x.astype(jnp.float32), w1_bf, b1_r, w2_bf, b2_s)

    # Back to the PyTorch (B, 1) layout; padded lanes discarded here.
    return out[0, :B].reshape(B, 1)


if __name__ == "__main__":
    input_size = 16
    hidden_size = 32

    key = jax.random.PRNGKey(0)
    kx, kw1, kb1, kw2, kb2 = jax.random.split(key, 5)

    w1 = jax.random.normal(kw1, (input_size, hidden_size), dtype=jnp.float32) * 0.1
    b1 = jax.random.normal(kb1, (hidden_size,), dtype=jnp.float32) * 0.1
    w2 = jax.random.normal(kw2, (hidden_size,), dtype=jnp.float32) * 0.1
    b2 = jax.random.normal(kb2, (), dtype=jnp.float32) * 0.1

    def ref_fwd(xv):
        return jax.nn.sigmoid(
            jnp.maximum(xv @ w1 + b1, 0.0) @ w2.reshape(hidden_size, 1) + b2)

    # 1) Small, module-consistent shape (single-tile path).
    x_small = jax.random.normal(kx, (8, input_size), dtype=jnp.float32)
    out_small = jax.block_until_ready(neural_net_forward(x_small, w1, b1, w2, b2))
    ref_small = ref_fwd(x_small)
    assert out_small.shape == (8, 1)
    err = jnp.max(jnp.abs(out_small - ref_small))
    assert jnp.allclose(out_small, ref_small, atol=5e-3, rtol=0.0), f"max err {err}"

    # 2) Multi-tile + ragged final tile path (batch not a multiple of the tile).
    x_multi = jax.random.normal(kx, (300, input_size), dtype=jnp.float32)
    out_multi = jax.block_until_ready(
        neural_net_forward(x_multi, w1, b1, w2, b2, block_b=128))
    ref_multi = ref_fwd(x_multi)
    assert out_multi.shape == (300, 1)
    err = jnp.max(jnp.abs(out_multi - ref_multi))
    assert jnp.allclose(out_multi, ref_multi, atol=5e-3, rtol=0.0), f"max err {err}"

    print("KERNEL_OK")
</pallas_src>

<mosaic_0001>
module attributes {stable_mosaic.version = 11 : i64} {
  func.func @mlp_kernel(%arg0: i32, %arg1: memref<8x16xf32, #tpu.memory_space<vmem>>, %arg2: memref<16x32xbf16, #tpu.memory_space<vmem>>, %arg3: memref<1x32xf32, #tpu.memory_space<vmem>>, %arg4: memref<1x32xbf16, #tpu.memory_space<vmem>>, %arg5: memref<1xf32, #tpu.memory_space<smem>>, %arg6: memref<1x8xf32, #tpu.memory_space<vmem>>) attributes {dimension_semantics = [#tpu.dimension_semantics<parallel>], iteration_bounds = array<i64: 1>, scalar_prefetch = 0 : i64, scratch_operands = 0 : i64, tpu.core_type = #tpu.core_type<tc>, window_params = [{transform_indices = @transform_0, window_bounds = array<i64: 8, 16>}, {pipeline_mode = #tpu.pipeline_mode<synchronous>, transform_indices = @transform_1, window_bounds = array<i64: 16, 32>}, {pipeline_mode = #tpu.pipeline_mode<synchronous>, transform_indices = @transform_2, window_bounds = array<i64: 1, 32>}, {pipeline_mode = #tpu.pipeline_mode<synchronous>, transform_indices = @transform_3, window_bounds = array<i64: 1, 32>}, {transform_indices = @transform_4, window_bounds = array<i64: 1>}, {transform_indices = @transform_5, window_bounds = array<i64: 1, 8>}]} {
    %c0 = arith.constant 0 : index
    %c0_0 = arith.constant 0 : index
    %0 = vector.load %arg1[%c0, %c0_0] : memref<8x16xf32, #tpu.memory_space<vmem>>, vector<8x16xf32>
    %1 = arith.truncf %0 : vector<8x16xf32> to vector<8x16xbf16>
    %c0_1 = arith.constant 0 : index
    %c0_2 = arith.constant 0 : index
    %2 = vector.load %arg2[%c0_1, %c0_2] : memref<16x32xbf16, #tpu.memory_space<vmem>>, vector<16x32xbf16>
    %cst = arith.constant dense<0.000000e+00> : vector<8x32xf32>
    %3 = tpu.matmul %1, %2, %cst {dimension_numbers = #tpu.dot_dimension_numbers<[1], [0], [0], [1], [0, 0, 1, 1], [], []>} : vector<8x16xbf16>, vector<16x32xbf16>, vector<8x32xf32> -> vector<8x32xf32>
    %c0_3 = arith.constant 0 : index
    %c0_4 = arith.constant 0 : index
    %4 = vector.load %arg3[%c0_3, %c0_4] : memref<1x32xf32, #tpu.memory_space<vmem>>, vector<1x32xf32>
    %5 = vector.broadcast %4 : vector<1x32xf32> to vector<8x32xf32>
    %6 = arith.addf %3, %5 : vector<8x32xf32>
    %cst_5 = arith.constant 0.000000e+00 : f32
    %7 = vector.broadcast %cst_5 : f32 to vector<8x32xf32>
    %8 = arith.maximumf %6, %7 : vector<8x32xf32>
    %c0_6 = arith.constant 0 : index
    %c0_7 = arith.constant 0 : index
    %9 = vector.load %arg4[%c0_6, %c0_7] : memref<1x32xbf16, #tpu.memory_space<vmem>>, vector<1x32xbf16>
    %10 = arith.truncf %8 : vector<8x32xf32> to vector<8x32xbf16>
    "tpu.trace_start"() <{level = 10 : i32, message = "oh,bh->ob"}> : () -> ()
    %cst_8 = arith.constant dense<0.000000e+00> : vector<1x8xf32>
    %11 = tpu.matmul %9, %10, %cst_8 {dimension_numbers = #tpu.dot_dimension_numbers<[1], [1], [0], [0], [0, 0, 1, 0], [], []>} : vector<1x32xbf16>, vector<8x32xbf16>, vector<1x8xf32> -> vector<1x8xf32>
    "tpu.trace_stop"() : () -> ()
    %c0_9 = arith.constant 0 : index
    %12 = memref.load %arg5[%c0_9] : memref<1xf32, #tpu.memory_space<smem>>
    %13 = vector.broadcast %12 : f32 to vector<1x8xf32>
    %14 = arith.addf %11, %13 : vector<1x8xf32>
    %cst_10 = arith.constant 0.000000e+00 : f32
    %15 = vector.broadcast %cst_10 : f32 to vector<1x8xf32>
    %16 = arith.subf %15, %14 : vector<1x8xf32>
    %17 = math.exp %16 : vector<1x8xf32>
    %cst_11 = arith.constant 1.000000e+00 : f32
    %18 = vector.broadcast %cst_11 : f32 to vector<1x8xf32>
    %19 = arith.addf %18, %17 : vector<1x8xf32>
    %cst_12 = arith.constant 1.000000e+00 : f32
    %20 = vector.broadcast %cst_12 : f32 to vector<1x8xf32>
    %21 = arith.divf %20, %19 : vector<1x8xf32>
    %c0_13 = arith.constant 0 : index
    %c0_14 = arith.constant 0 : index
    %22 = vector.load %arg6[%c0_13, %c0_14] : memref<1x8xf32, #tpu.memory_space<vmem>>, vector<1x8xf32>
    tpu.vector_store %arg6[%c0_13, %c0_14], %21 {strides = array<i32>} : memref<1x8xf32, #tpu.memory_space<vmem>>, vector<1x8xf32>,
    return
  }
  func.func @transform_0(%arg0: i32) -> (i32, i32) {
    %c0_i32 = arith.constant 0 : i32
    %c0_i32_0 = arith.constant 0 : i32
    return %arg0, %c0_i32 : i32, i32
  }
  func.func @transform_1(%arg0: i32) -> (i32, i32) {
    %c0_i32 = arith.constant 0 : i32
    %c0_i32_0 = arith.constant 0 : i32
    %c0_i32_1 = arith.constant 0 : i32
    return %c0_i32, %c0_i32_0 : i32, i32
  }
  func.func @transform_2(%arg0: i32) -> (i32, i32) {
    %c0_i32 = arith.constant 0 : i32
    %c0_i32_0 = arith.constant 0 : i32
    %c0_i32_1 = arith.constant 0 : i32
    return %c0_i32, %c0_i32_0 : i32, i32
  }
  func.func @transform_3(%arg0: i32) -> (i32, i32) {
    %c0_i32 = arith.constant 0 : i32
    %c0_i32_0 = arith.constant 0 : i32
    %c0_i32_1 = arith.constant 0 : i32
    return %c0_i32, %c0_i32_0 : i32, i32
  }
  func.func @transform_4(%arg0: i32) -> i32 {
    %c0_i32 = arith.constant 0 : i32
    %c0_i32_0 = arith.constant 0 : i32
    return %c0_i32 : i32
  }
  func.func @transform_5(%arg0: i32) -> (i32, i32) {
    %c0_i32 = arith.constant 0 : i32
    %c0_i32_0 = arith.constant 0 : i32
    return %c0_i32, %arg0 : i32, i32
  }
}

</mosaic_0001>

<bundles_post_ra>
// kernel: neural_net_forward.1
= control target key start
LH: loop header
LB: loop body
LE: loop exit
PB: predicated region body
PF: predicated region fallthrough
CT: control target
= control target key end

     0   :  { %s204_s0 = inlined_call_operand.vmem [shape: f32[8,16], index: 0, kind: input, shape index: {}]   ;;  %s205_s1 = inlined_call_operand.vmem [shape: bf16[16,32], index: 1, kind: input, shape index: {}]   ;;  %s206_s2 = inlined_call_operand.vmem [shape: f32[1,32], index: 2, kind: input, shape index: {}]   ;;  %s207_s3 = inlined_call_operand.vmem [shape: bf16[1,32], index: 3, kind: input, shape index: {}]   ;;  %s208_s4 = inlined_call_operand.<no memory space> [shape: f32[1], index: 4, kind: input, shape index: {}]   ;;  %s209_s5 = inlined_call_operand.hbm [shape: f32[1,8], index: 5, kind: output, shape index: {}]  }
   0x1   :  { %v122_v0 = vld [vmem:[%s205_s1] sm:$0xff] }
   0x2   :  { %v23_v1 = vld [vmem:[%s204_s0] sm:$0xff] }
   0x3   :  { %v24_v2 = vpack.c.bf16 %v23_v1, %v23_v1 }
   0x4   :  { %11 = vsyncpa [#allocation4], 0  ;;  %48 = vmatpush.bf16.msra.mxu0 %v122_v0  ;;  %vm37_vm0 = vcmask 130048   ;;  %v124_v3 = vld [vmem:[%s206_s2] ss:$0 sm:$0xff]  ;;  %vm59_vm1 = vcmask 261120   ;;  %v58_v11 = vstv %s208_s4 }
   0x5   :  { %v55_v10 = vld [vmem:[%s207_s3] sm:$0x1]  ;;  %s155_s2 = smov [#allocation3]   ;;  %s107_s27 = sshll.u32 %s209_s5, 4  ;;  %vm98_vm5 = vcmask 57344   ;;  %s108_s27 = int_to_ptr.hbm [resolvable:$true] %s107_s27 }
   0x6   :  { %s105_s3 = sshll.u32 %s155_s2, 4  ;;  %s106_s3 = int_to_ptr.vmem [resolvable:$true] %s105_s3 }
   0x7   :  { %120 = vmatmul.msk.bf16.vlgmr.msra.gmra.mxu0 %vm37_vm0, %v24_v2 }
  0x84   :  { %v50_v4 = vpop.f32.mrf.mxu0 }
  0x85   :  { %v51_v5 = vadd.f32 %v124_v3, %v50_v4 }
  0x87   :  { %v54_v6 = vmax.f32 %v51_v5, 0.0 }
  0x89   :  { %v56_v7 = vpack.c.bf16 %v54_v6, %v54_v6 }
  0x8b   :  { %v64_v8 = vsel %vm59_vm1, %v56_v7, 0 }
  0x8c   :  { %v52_v9 = vpop.f32.mrf.mxu0  ;;  %73 = vmatpush.bf16.xpose.msra.mxu1 %v64_v8 }
  0x93   :  { %121 = vmatmul.msk.bf16.vlgmr.msra.gmra.mxu1 %vm59_vm1, %v55_v10 }
 0x110   :  { %v75_v12 = vpop.f32.mrf.mxu1 }
 0x111   :  { %v76_v13 = vadd.f32 %v75_v12, %v58_v11 }
 0x113   :  { %v79_v14 = vsub.f32 0.0, %v76_v13 }
 0x115   :  { %v80_v15 = vmul.f32 1.442695, %v79_v14 }
 0x117   :  { %125 = vpow2.f32 %v80_v15 }
 0x118   :  { %v77_v16 = vpop.f32.mrf.mxu1 }
 0x11d   :  { %v126_v17 = vpop.eup %125 }
 0x11e   :  { %v82_v18 = vadd.f32 1.0, %v126_v17 }
 0x120   :  { %127 = vrcp.f32 %v82_v18  ;;  %v94_v22 = vand.u32 2147483648, %v82_v18  ;;  %v92_v24 = vand.u32 2147483647, %v82_v18  ;;  %vm88_vm3 = vweird.f32 %v82_v18 }
 0x122   :  { %v95_v26 = vor.u32 1.1754944e-38, %v94_v22  ;;  %vm93_vm6 = vcmp.eq.f32.partialorder %v92_v24, 8.507059e+37 }
 0x126   :  { %v128_v19 = vpop.eup %127 }
 0x127   :  { %v84_v20 = vmul.f32 %v128_v19, %v82_v18  ;;  %vm89_vm2 = vweird.f32 %v128_v19 }
 0x128   :  { %vm90_vm4 = vmor %vm88_vm3, %vm89_vm2 }
 0x129   :  { %v85_v21 = vsub.f32 1.0, %v84_v20 }
 0x12b   :  { %v86_v23 = vmul.f32 %v128_v19, %v85_v21 }
 0x12d   :  { %v87_v25 = vadd.f32 %v128_v19, %v86_v23 }
 0x12f   :  { %v91_v27 = vsel %vm90_vm4, %v128_v19, %v87_v25 }
 0x130   :  { %v96_v28 = vsel %vm93_vm6, %v95_v26, %v91_v27 }
 0x131   :  { %99 = vst.msk [vmem:[#allocation3] sm:$0x1] %vm98_vm5, %v96_v28 }
 0x132   :  { %110 = dma.vmem_to_hbm [thread:$0]  %s106_s3, 16, %s108_s27, [#allocation4]  }
 0x133   :  { %153 = dma.done.wait [#allocation4], 16  }
 0x134   :  { %154 = vsyncadd [#allocation4], 4294967280 }
 0x135   :  { %115 = vsyncpa [#allocation4], 1 }

</bundles_post_ra>
